<compile_context>
chip_gen: v7x
topology: tpu7x:2x2x1
jax: 0.10.0
libtpu: 0.0.40
codegen_flags: <defaults>
</compile_context>

<pallas_src>
import functools

import jax
import jax.numpy as jnp
from jax.experimental import pallas as pl
from jax.experimental.pallas import tpu as pltpu

TILE_B = 256  # lane-dense batch tile (multiple of 128)


def mlp_kernel(x_ref, w1_ref, b1_ref, w2_ref, b2_ref, w3_ref, b3_ref,
               alpha_ref, o_ref):
    # Transposed layout: x_ref is (n_in, TILE_B); batch sits on the lane axis.
    x = x_ref[...]                       # f32 (32, TILE_B)
    alpha = alpha_ref[0]                 # SMEM scalar (PReLU weight)

    # Linear 1 + ReLU:  h1 = W1 @ x + b1        (64, TILE_B)
    h1 = jnp.dot(w1_ref[...], x.astype(jnp.bfloat16),
                 preferred_element_type=jnp.float32) + b1_ref[...]
    h1 = jnp.maximum(h1, 0.0)

    # Linear 2 + PReLU: h2 = W2 @ h1 + b2       (32, TILE_B)
    h2 = jnp.dot(w2_ref[...], h1.astype(jnp.bfloat16),
                 preferred_element_type=jnp.float32) + b2_ref[...]
    h2 = jnp.where(h2 >= 0.0, h2, alpha * h2)

    # Linear 3:         h3 = W3 @ h2 + b3       (8, TILE_B)
    h3 = jnp.dot(w3_ref[...], h2.astype(jnp.bfloat16),
                 preferred_element_type=jnp.float32) + b3_ref[...]

    # LogSoftmax over features (sublane axis 0), numerically stabilized.
    m = jnp.max(h3, axis=0, keepdims=True)
    s = h3 - m
    lse = jnp.log(jnp.sum(jnp.exp(s), axis=0, keepdims=True))
    o_ref[...] = (s - lse).astype(o_ref.dtype)


@functools.partial(jax.jit, static_argnames=())
def nn_forward(x, params):
    """x: (B, 32) f32.  Returns log-probabilities (B, 8) f32."""
    (w1, b1), (w2, b2), (w3, b3), alpha = params
    B, n_in = x.shape
    h1d, h2d, n_out = w1.shape[0], w2.shape[0], w3.shape[0]

    # MXU operands in bf16 (one-time cast outside the kernel).
    w1b = w1.astype(jnp.bfloat16)
    w2b = w2.astype(jnp.bfloat16)
    w3b = w3.astype(jnp.bfloat16)

    # Pad batch to a multiple of TILE_B and transpose so batch is on lanes.
    B_pad = ((B + TILE_B - 1) // TILE_B) * TILE_B
    xt = jnp.pad(x.T, ((0, 0), (0, B_pad - B)))          # (32, B_pad)
    grid_b = B_pad // TILE_B

    const_map = lambda i: (0, 0)
    cost = pl.CostEstimate(
        flops=2 * B_pad * (n_in * h1d + h1d * h2d + h2d * n_out),
        transcendentals=B_pad * (n_out + 1),
        bytes_accessed=(xt.size + B_pad * n_out) * 4
        + (w1b.size + w2b.size + w3b.size) * 2
        + (b1.size + b2.size + b3.size + alpha.size) * 4,
    )

    out_t = pl.pallas_call(
        mlp_kernel,
        out_shape=jax.ShapeDtypeStruct((n_out, B_pad), jnp.float32),
        grid=(grid_b,),
        in_specs=[
            pl.BlockSpec((n_in, TILE_B), lambda i: (0, i)),   # x tile
            pl.BlockSpec(w1b.shape, const_map),               # weights stay resident
            pl.BlockSpec(b1.shape, const_map),
            pl.BlockSpec(w2b.shape, const_map),
            pl.BlockSpec(b2.shape, const_map),
            pl.BlockSpec(w3b.shape, const_map),
            pl.BlockSpec(b3.shape, const_map),
            pl.BlockSpec(memory_space=pltpu.MemorySpace.SMEM),  # alpha scalar
        ],
        out_specs=pl.BlockSpec((n_out, TILE_B), lambda i: (0, i)),
        compiler_params=pltpu.CompilerParams(
            dimension_semantics=("parallel",),
            vmem_limit_bytes=32 * 1024 * 1024,
        ),
        cost_estimate=cost,
    )(xt, w1b, b1, w2b, b2, w3b, b3, alpha)

    return out_t[:, :B].T                                    # (B, 8)


def nn_forward_ref(x, params):
    """Pure-JAX reference with the same bf16-operand / f32-accumulate matmuls."""
    (w1, b1), (w2, b2), (w3, b3), alpha = params
    xt = x.T.astype(jnp.bfloat16)
    h1 = jnp.dot(w1.astype(jnp.bfloat16), xt,
                 preferred_element_type=jnp.float32) + b1
    h1 = jnp.maximum(h1, 0.0)
    h2 = jnp.dot(w2.astype(jnp.bfloat16), h1.astype(jnp.bfloat16),
                 preferred_element_type=jnp.float32) + b2
    h2 = jnp.where(h2 >= 0.0, h2, alpha[0] * h2)
    h3 = jnp.dot(w3.astype(jnp.bfloat16), h2.astype(jnp.bfloat16),
                 preferred_element_type=jnp.float32) + b3
    return jax.nn.log_softmax(h3, axis=0).T


def init_params(key, nneurons):
    """Mimics torch.nn.Linear default init (uniform +/- 1/sqrt(fan_in)).

    Weights kept in the torch (out_features, in_features) orientation; biases
    stored as (out_features, 1) so they broadcast across the lane (batch) axis.
    """
    params = []
    for n_in, n_out in zip(nneurons[:-1], nneurons[1:]):
        key, kw, kb = jax.random.split(key, 3)
        bound = 1.0 / jnp.sqrt(float(n_in))
        w = jax.random.uniform(kw, (n_out, n_in), jnp.float32, -bound, bound)
        b = jax.random.uniform(kb, (n_out, 1), jnp.float32, -bound, bound)
        params.append((w, b))
    alpha = jnp.full((1,), 0.25, dtype=jnp.float32)  # PReLU default init
    return (*params, alpha)


if __name__ == "__main__":
    nneurons = [32, 64, 32, 8]
    batch = 8

    key = jax.random.PRNGKey(0)
    key_x, key_p = jax.random.split(key)

    x = jax.random.normal(key_x, (batch, nneurons[0]), dtype=jnp.float32)
    params = init_params(key_p, nneurons)

    out = nn_forward(x, params)
    out = jax.block_until_ready(out)

    # sanity: shape, log-softmax rows sum (in prob space) to ~1, matches reference
    assert out.shape == (batch, nneurons[-1])
    row_sums = jnp.sum(jnp.exp(out), axis=1)
    assert bool(jnp.allclose(row_sums, 1.0, atol=1e-4))
    ref = nn_forward_ref(x, params)
    assert bool(jnp.allclose(out, ref, atol=1e-3, rtol=1e-3))

    print("KERNEL_OK")
</pallas_src>

<mosaic_0001>
module attributes {stable_mosaic.version = 11 : i64} {
  func.func @mlp_kernel(%arg0: i32, %arg1: memref<32x256xf32, #tpu.memory_space<vmem>>, %arg2: memref<64x32xbf16, #tpu.memory_space<vmem>>, %arg3: memref<64x1xf32, #tpu.memory_space<vmem>>, %arg4: memref<32x64xbf16, #tpu.memory_space<vmem>>, %arg5: memref<32x1xf32, #tpu.memory_space<vmem>>, %arg6: memref<8x32xbf16, #tpu.memory_space<vmem>>, %arg7: memref<8x1xf32, #tpu.memory_space<vmem>>, %arg8: memref<1xf32, #tpu.memory_space<smem>>, %arg9: memref<8x256xf32, #tpu.memory_space<vmem>>) attributes {dimension_semantics = [#tpu.dimension_semantics<parallel>], iteration_bounds = array<i64: 1>, scalar_prefetch = 0 : i64, scratch_operands = 0 : i64, tpu.core_type = #tpu.core_type<tc>, window_params = [{transform_indices = @transform_0, window_bounds = array<i64: 32, 256>}, {pipeline_mode = #tpu.pipeline_mode<synchronous>, transform_indices = @transform_1, window_bounds = array<i64: 64, 32>}, {pipeline_mode = #tpu.pipeline_mode<synchronous>, transform_indices = @transform_2, window_bounds = array<i64: 64, 1>}, {pipeline_mode = #tpu.pipeline_mode<synchronous>, transform_indices = @transform_3, window_bounds = array<i64: 32, 64>}, {pipeline_mode = #tpu.pipeline_mode<synchronous>, transform_indices = @transform_4, window_bounds = array<i64: 32, 1>}, {pipeline_mode = #tpu.pipeline_mode<synchronous>, transform_indices = @transform_5, window_bounds = array<i64: 8, 32>}, {pipeline_mode = #tpu.pipeline_mode<synchronous>, transform_indices = @transform_6, window_bounds = array<i64: 8, 1>}, {transform_indices = @transform_7, window_bounds = array<i64: 1>}, {transform_indices = @transform_8, window_bounds = array<i64: 8, 256>}]} {
    %c0 = arith.constant 0 : index
    %c0_0 = arith.constant 0 : index
    %0 = vector.load %arg1[%c0, %c0_0] : memref<32x256xf32, #tpu.memory_space<vmem>>, vector<32x256xf32>
    %c0_1 = arith.constant 0 : index
    %1 = memref.load %arg8[%c0_1] : memref<1xf32, #tpu.memory_space<smem>>
    %c0_2 = arith.constant 0 : index
    %c0_3 = arith.constant 0 : index
    %2 = vector.load %arg2[%c0_2, %c0_3] : memref<64x32xbf16, #tpu.memory_space<vmem>>, vector<64x32xbf16>
    %3 = arith.truncf %0 : vector<32x256xf32> to vector<32x256xbf16>
    %cst = arith.constant dense<0.000000e+00> : vector<64x256xf32>
    %4 = tpu.matmul %2, %3, %cst {dimension_numbers = #tpu.dot_dimension_numbers<[1], [0], [0], [1], [0, 0, 1, 1], [], []>} : vector<64x32xbf16>, vector<32x256xbf16>, vector<64x256xf32> -> vector<64x256xf32>
    %c0_4 = arith.constant 0 : index
    %c0_5 = arith.constant 0 : index
    %5 = vector.load %arg3[%c0_4, %c0_5] : memref<64x1xf32, #tpu.memory_space<vmem>>, vector<64x1xf32>
    %6 = vector.broadcast %5 : vector<64x1xf32> to vector<64x256xf32>
    %7 = arith.addf %4, %6 : vector<64x256xf32>
    %cst_6 = arith.constant 0.000000e+00 : f32
    %8 = vector.broadcast %cst_6 : f32 to vector<64x256xf32>
    %9 = arith.maximumf %7, %8 : vector<64x256xf32>
    %c0_7 = arith.constant 0 : index
    %c0_8 = arith.constant 0 : index
    %10 = vector.load %arg4[%c0_7, %c0_8] : memref<32x64xbf16, #tpu.memory_space<vmem>>, vector<32x64xbf16>
    %11 = arith.truncf %9 : vector<64x256xf32> to vector<64x256xbf16>
    %cst_9 = arith.constant dense<0.000000e+00> : vector<32x256xf32>
    %12 = tpu.matmul %10, %11, %cst_9 {dimension_numbers = #tpu.dot_dimension_numbers<[1], [0], [0], [1], [0, 0, 1, 1], [], []>} : vector<32x64xbf16>, vector<64x256xbf16>, vector<32x256xf32> -> vector<32x256xf32>
    %c0_10 = arith.constant 0 : index
    %c0_11 = arith.constant 0 : index
    %13 = vector.load %arg5[%c0_10, %c0_11] : memref<32x1xf32, #tpu.memory_space<vmem>>, vector<32x1xf32>
    %14 = vector.broadcast %13 : vector<32x1xf32> to vector<32x256xf32>
    %15 = arith.addf %12, %14 : vector<32x256xf32>
    %cst_12 = arith.constant 0.000000e+00 : f32
    %16 = vector.broadcast %cst_12 : f32 to vector<32x256xf32>
    %17 = arith.cmpf oge, %15, %16 : vector<32x256xf32>
    %18 = vector.broadcast %1 : f32 to vector<32x256xf32>
    %19 = arith.mulf %18, %15 : vector<32x256xf32>
    %20 = arith.select %17, %15, %19 : vector<32x256xi1>, vector<32x256xf32>
    %c0_13 = arith.constant 0 : index
    %c0_14 = arith.constant 0 : index
    %21 = vector.load %arg6[%c0_13, %c0_14] : memref<8x32xbf16, #tpu.memory_space<vmem>>, vector<8x32xbf16>
    %22 = arith.truncf %20 : vector<32x256xf32> to vector<32x256xbf16>
    %cst_15 = arith.constant dense<0.000000e+00> : vector<8x256xf32>
    %23 = tpu.matmul %21, %22, %cst_15 {dimension_numbers = #tpu.dot_dimension_numbers<[1], [0], [0], [1], [0, 0, 1, 1], [], []>} : vector<8x32xbf16>, vector<32x256xbf16>, vector<8x256xf32> -> vector<8x256xf32>
    %c0_16 = arith.constant 0 : index
    %c0_17 = arith.constant 0 : index
    %24 = vector.load %arg7[%c0_16, %c0_17] : memref<8x1xf32, #tpu.memory_space<vmem>>, vector<8x1xf32>
    %25 = vector.broadcast %24 : vector<8x1xf32> to vector<8x256xf32>
    %26 = arith.addf %23, %25 : vector<8x256xf32>
    %cst_18 = arith.constant dense<0xFF800000> : vector<256xf32>
    %27 = vector.multi_reduction <maximumf>, %26, %cst_18 [0] : vector<8x256xf32> to vector<256xf32>
    %28 = vector.shape_cast %27 : vector<256xf32> to vector<1x256xf32>
    %29 = vector.broadcast %28 : vector<1x256xf32> to vector<8x256xf32>
    %30 = arith.subf %26, %29 : vector<8x256xf32>
    %31 = math.exp %30 : vector<8x256xf32>
    %cst_19 = arith.constant dense<0.000000e+00> : vector<256xf32>
    %32 = vector.multi_reduction <add>, %31, %cst_19 [0] : vector<8x256xf32> to vector<256xf32>
    %33 = vector.shape_cast %32 : vector<256xf32> to vector<1x256xf32>
    %34 = math.log %33 : vector<1x256xf32>
    %35 = vector.broadcast %34 : vector<1x256xf32> to vector<8x256xf32>
    %36 = arith.subf %30, %35 : vector<8x256xf32>
    %c0_20 = arith.constant 0 : index
    %c0_21 = arith.constant 0 : index
    %37 = vector.load %arg9[%c0_20, %c0_21] : memref<8x256xf32, #tpu.memory_space<vmem>>, vector<8x256xf32>
    tpu.vector_store %arg9[%c0_20, %c0_21], %36 {strides = array<i32>} : memref<8x256xf32, #tpu.memory_space<vmem>>, vector<8x256xf32>,
    return
  }
  func.func @transform_0(%arg0: i32) -> (i32, i32) {
    %c0_i32 = arith.constant 0 : i32
    %c0_i32_0 = arith.constant 0 : i32
    return %c0_i32, %arg0 : i32, i32
  }
  func.func @transform_1(%arg0: i32) -> (i32, i32) {
    %c0_i32 = arith.constant 0 : i32
    %c0_i32_0 = arith.constant 0 : i32
    %c0_i32_1 = arith.constant 0 : i32
    return %c0_i32, %c0_i32_0 : i32, i32
  }
  func.func @transform_2(%arg0: i32) -> (i32, i32) {
    %c0_i32 = arith.constant 0 : i32
    %c0_i32_0 = arith.constant 0 : i32
    %c0_i32_1 = arith.constant 0 : i32
    return %c0_i32, %c0_i32_0 : i32, i32
  }
  func.func @transform_3(%arg0: i32) -> (i32, i32) {
    %c0_i32 = arith.constant 0 : i32
    %c0_i32_0 = arith.constant 0 : i32
    %c0_i32_1 = arith.constant 0 : i32
    return %c0_i32, %c0_i32_0 : i32, i32
  }
  func.func @transform_4(%arg0: i32) -> (i32, i32) {
    %c0_i32 = arith.constant 0 : i32
    %c0_i32_0 = arith.constant 0 : i32
    %c0_i32_1 = arith.constant 0 : i32
    return %c0_i32, %c0_i32_0 : i32, i32
  }
  func.func @transform_5(%arg0: i32) -> (i32, i32) {
    %c0_i32 = arith.constant 0 : i32
    %c0_i32_0 = arith.constant 0 : i32
    %c0_i32_1 = arith.constant 0 : i32
    return %c0_i32, %c0_i32_0 : i32, i32
  }
  func.func @transform_6(%arg0: i32) -> (i32, i32) {
    %c0_i32 = arith.constant 0 : i32
    %c0_i32_0 = arith.constant 0 : i32
    %c0_i32_1 = arith.constant 0 : i32
    return %c0_i32, %c0_i32_0 : i32, i32
  }
  func.func @transform_7(%arg0: i32) -> i32 {
    %c0_i32 = arith.constant 0 : i32
    %c0_i32_0 = arith.constant 0 : i32
    return %c0_i32 : i32
  }
  func.func @transform_8(%arg0: i32) -> (i32, i32) {
    %c0_i32 = arith.constant 0 : i32
    %c0_i32_0 = arith.constant 0 : i32
    return %c0_i32, %arg0 : i32, i32
  }
}

</mosaic_0001>

<bundles_post_ra>
// kernel: nn_forward.1
= control target key start
LH: loop header
LB: loop body
LE: loop exit
PB: predicated region body
PF: predicated region fallthrough
CT: control target
= control target key end

     0   :  { %v480_v3 = vmov 0   ;;  %vm120_vm0 = vcmask 261120   ;;  %vm268_vm1 = vcmask 523264   ;;  %s633_s0 = inlined_call_operand.vmem [shape: f32[32,256], index: 0, kind: input, shape index: {}]   ;;  %s634_s1 = inlined_call_operand.vmem [shape: bf16[64,32], index: 1, kind: input, shape index: {}]   ;;  %s635_s2 = inlined_call_operand.vmem [shape: f32[64,1], index: 2, kind: input, shape index: {}]   ;;  %s636_s4 = inlined_call_operand.vmem [shape: f32[32,1], index: 4, kind: input, shape index: {}]   ;;  %s637_s6 = inlined_call_operand.vmem [shape: f32[8,1], index: 6, kind: input, shape index: {}]   ;;  %s638_s3 = inlined_call_operand.vmem [shape: bf16[32,64], index: 3, kind: input, shape index: {}]   ;;  %s639_s7 = inlined_call_operand.<no memory space> [shape: f32[1], index: 7, kind: input, shape index: {}]   ;;  %s640_s5 = inlined_call_operand.vmem [shape: bf16[8,32], index: 5, kind: input, shape index: {}]   ;;  %s641_s8 = inlined_call_operand.vmem [shape: f32[8,256], index: 8, kind: output, shape index: {}]  }
   0x1   :  { %v32_v0 = vld [vmem:[%s633_s0 + $0x8] sm:$0xff]  ;;  %v34_v1 = vld [vmem:[%s633_s0 + $0x18] sm:$0xff]  ;;  %v31_v2 = vld [vmem:[%s633_s0] sm:$0xff]  ;;  %165 = vmatprep.mubr.bf16.mxu0 %v480_v3  ;;  %464 = vset.pattern.permute.xlu0 %v480_v3 }
   0x2   :  { %v49_v4 = vpack.c.bf16 %v34_v1, %v32_v0  ;;  %v33_v5 = vld [vmem:[%s633_s0 + $0x10] sm:$0xff]  ;;  %v36_v6 = vld [vmem:[%s633_s0 + $0x28] sm:$0xff]  ;;  %v38_v7 = vld [vmem:[%s633_s0 + $0x38] sm:$0xff]  ;;  %465 = vset.pattern.permute.xlu1 %v480_v3  ;;  %307 = vmatprep.mubr.bf16.mxu1 %v480_v3 }
   0x3   :  { %v48_v8 = vpack.c.bf16 %v33_v5, %v31_v2  ;;  %v51_v9 = vpack.c.bf16 %v38_v7, %v36_v6  ;;  %v35_v10 = vld [vmem:[%s633_s0 + $0x20] sm:$0xff]  ;;  %v37_v11 = vld [vmem:[%s633_s0 + $0x30] sm:$0xff]  ;;  %v53_v16 = vld [vmem:[%s635_s2 + $0x8] sm:$0xff] }
   0x4   :  { %133 = vmatprep.subr.bf16.mxu0 %v49_v4  ;;  %v50_v12 = vpack.c.bf16 %v37_v11, %v35_v10  ;;  %v52_v13 = vld [vmem:[%s635_s2] sm:$0xff]  ;;  %v54_v15 = vld [vmem:[%s635_s2 + $0x10] sm:$0xff]  ;;  %v55_v17 = vld [vmem:[%s635_s2 + $0x18] sm:$0xff] }
   0x5   :  { %134 = vmatpush1.bf16.msra.mxu0 %v48_v8  ;;  %v466_v14 = vld [vmem:[%s634_s1] sm:$0xff]   ;;  %62 = vperm.xlu0 %464, %v52_v13   ;;  %v57_v19 = vld [vmem:[%s635_s2 + $0x28] sm:$0xff]  ;;  %v58_v21 = vld [vmem:[%s635_s2 + $0x30] sm:$0xff] }
   0x6   :  { %135 = vmatprep.subr.bf16.mxu0 %v51_v9  ;;  %72 = vperm.xlu1 %465, %v54_v15   ;;  %v56_v18 = vld [vmem:[%s635_s2 + $0x20] sm:$0xff]  ;;  %v467_v20 = vld [vmem:[%s634_s1 + $0x8] sm:$0xff]   ;;  %v59_v22 = vld [vmem:[%s635_s2 + $0x38] sm:$0xff] }
   0x7   :  { %v234_v23 = vld [vmem:[%s636_s4] sm:$0xff]  ;;  %v235_v24 = vld [vmem:[%s636_s4 + $0x8] sm:$0xff]  ;;  %v468_v25 = vld [vmem:[%s634_s1 + $0x10] sm:$0xff]  }
   0x8   :  { %v236_v26 = vld [vmem:[%s636_s4 + $0x10] sm:$0xff]  ;;  %v237_v27 = vld [vmem:[%s636_s4 + $0x18] sm:$0xff]  ;;  %v358_v28 = vld [vmem:[%s637_s6] sm:$0xff] }
   0x9   :  { %136 = vmatpush1.bf16.msra.mxu0 %v50_v12  ;;  %67 = vperm.xlu0 %464, %v53_v16   ;;  %v469_v29 = vld [vmem:[%s634_s1 + $0x18] sm:$0xff]  }
   0xa   :  { %77 = vperm.xlu1 %465, %v55_v17  }
   0xc   :  { %454 = vmatmul.mubr.msk.bf16.vlgmr.msra.gmra.mrb[0].mxu0 %vm120_vm0, %v466_v14 }
   0xd   :  { %175 = vmatprep.mubr.bf16.mxu0 %v480_v3  ;;  %82 = vperm.xlu0 %464, %v56_v18  }
   0xe   :  { %87 = vperm.xlu1 %465, %v57_v19  }
  0x11   :  { %92 = vperm.xlu0 %464, %v58_v21  }
  0x12   :  { %97 = vperm.xlu1 %465, %v59_v22  }
  0x14   :  { %455 = vmatmul.mubr.msk.bf16.gmra.mrb[4].mxu0 %vm120_vm0, %v467_v20 }
  0x15   :  { %185 = vmatprep.mubr.bf16.mxu0 %v480_v3  ;;  %240 = vperm.xlu0 %464, %v234_v23  }
  0x16   :  { %245 = vperm.xlu1 %465, %v235_v24  }
  0x19   :  { %250 = vperm.xlu0 %464, %v236_v26  }
  0x1a   :  { %255 = vperm.xlu1 %465, %v237_v27  }
  0x1c   :  { %456 = vmatmul.mubr.msk.bf16.gmra.mrb[8].mxu0 %vm120_vm0, %v468_v25 }
  0x1d   :  { %195 = vmatprep.mubr.bf16.mxu0 %v480_v3  ;;  %361 = vperm.xlu0 %464, %v358_v28  }
  0x24   :  { %457 = vmatmul.mubr.msk.bf16.gmra.mrb[12].mxu0 %vm120_vm0, %v469_v29 }
  0x84   :  { %v63_v30 = vpop.permute.xlu0 %62 }
  0x85   :  { %v73_v39 = vpop.permute.xlu1 %72 }
  0x88   :  { %v68_v34 = vpop.permute.xlu0 %67 }
  0x89   :  { %v78_v50 = vpop.permute.xlu1 %77 }
  0x8c   :  { %v83_v61 = vpop.permute.xlu0 %82 }
  0x8d   :  { %v88_v2 = vpop.permute.xlu1 %87 }
  0x90   :  { %v93_v14 = vpop.permute.xlu0 %92 }
  0x91   :  { %v98_v19 = vpop.permute.xlu1 %97 }
  0xdf   :  { %v167_v31 = vpop.f32.mrb[0].mxu0 }
  0xe0   :  { %v168_v32 = vadd.f32 %v167_v31, %v63_v30  ;;  %v169_v33 = vpop.f32.mrb[1].mxu0  ;;  %v470_v31 = vld [vmem:[%s638_s3] sm:$0xff]  }
  0xe1   :  { %v170_v35 = vadd.f32 %v169_v33, %v63_v30  ;;  %v171_v36 = vpop.f32.mrb[2].mxu0  ;;  %v241_v33 = vpop.permute.xlu0 %240 }
  0xe2   :  { %v172_v37 = vadd.f32 %v171_v36, %v68_v34  ;;  %v173_v38 = vpop.f32.mrb[3].mxu0  ;;  %v206_v41 = vmax.f32 %v168_v32, 0.0  ;;  %v471_v32 = vld [vmem:[%s638_s3 + $0x8] sm:$0xff]  }
  0xe3   :  { %v174_v40 = vadd.f32 %v173_v38, %v68_v34  ;;  %v207_v43 = vmax.f32 %v170_v35, 0.0  ;;  %v336_v35 = vstv %s639_s7  ;;  %v246_v38 = vpop.permute.xlu1 %245 }
  0xe4   :  { %v208_v42 = vmax.f32 %v172_v37, 0.0 }
  0xe5   :  { %v209_v44 = vmax.f32 %v174_v40, 0.0 }
  0xe6   :  { %v226_v45 = vpack.c.bf16 %v208_v42, %v206_v41 }
  0xe7   :  { %v177_v46 = vpop.f32.mrb[4].mxu0  ;;  %v227_v47 = vpack.c.bf16 %v209_v44, %v207_v43 }
  0xe8   :  { %v178_v48 = vadd.f32 %v177_v46, %v73_v39  ;;  %v179_v49 = vpop.f32.mrb[5].mxu0 }
  0xe9   :  { %v180_v51 = vadd.f32 %v179_v49, %v73_v39  ;;  %v181_v52 = vpop.f32.mrb[6].mxu0  ;;  %275 = vmatprep.subr.bf16.mxu1 %v227_v47  ;;  %v251_v49 = vpop.permute.xlu0 %250 }
  0xea   :  { %v182_v53 = vadd.f32 %v181_v52, %v78_v50  ;;  %v183_v54 = vpop.f32.mrb[7].mxu0  ;;  %276 = vmatpush1.bf16.msra.mxu1 %v226_v45  ;;  %v210_v56 = vmax.f32 %v178_v48, 0.0 }
  0xeb   :  { %v184_v55 = vadd.f32 %v183_v54, %v78_v50  ;;  %v211_v58 = vmax.f32 %v180_v51, 0.0 }
  0xec   :  { %v212_v57 = vmax.f32 %v182_v53, 0.0 }
  0xed   :  { %v213_v59 = vmax.f32 %v184_v55, 0.0 }
  0xee   :  { %v228_v60 = vpack.c.bf16 %v212_v57, %v210_v56  ;;  %v256_v57 = vpop.permute.xlu1 %255 }
  0xef   :  { %v229_v62 = vpack.c.bf16 %v213_v59, %v211_v58  ;;  %v187_v63 = vpop.f32.mrb[8].mxu0 }
  0xf0   :  { %v188_v0 = vadd.f32 %v187_v63, %v83_v61  ;;  %v189_v1 = vpop.f32.mrb[9].mxu0 }
  0xf1   :  { %v190_v4 = vadd.f32 %v189_v1, %v83_v61  ;;  %v191_v5 = vpop.f32.mrb[10].mxu0  ;;  %277 = vmatprep.subr.bf16.mxu1 %v229_v62 }
  0xf2   :  { %v192_v6 = vadd.f32 %v191_v5, %v88_v2  ;;  %v193_v7 = vpop.f32.mrb[11].mxu0  ;;  %278 = vmatpush1.bf16.msra.mxu1 %v228_v60  ;;  %v214_v9 = vmax.f32 %v188_v0, 0.0 }
  0xf3   :  { %v194_v8 = vadd.f32 %v193_v7, %v88_v2  ;;  %v215_v11 = vmax.f32 %v190_v4, 0.0 }
  0xf4   :  { %v216_v10 = vmax.f32 %v192_v6, 0.0 }
  0xf5   :  { %v217_v12 = vmax.f32 %v194_v8, 0.0 }
  0xf6   :  { %v230_v13 = vpack.c.bf16 %v216_v10, %v214_v9  ;;  %v353_v10 = vld [vmem:[%s640_s5] sm:$0xf] }
  0xf7   :  { %v231_v15 = vpack.c.bf16 %v217_v12, %v215_v11  ;;  %v197_v16 = vpop.f32.mrb[12].mxu0  ;;  %v362_v11 = vpop.permute.xlu0 %361 }
  0xf8   :  { %v198_v17 = vadd.f32 %v197_v16, %v93_v14  ;;  %v199_v18 = vpop.f32.mrb[13].mxu0 }
  0xf9   :  { %v200_v20 = vadd.f32 %v199_v18, %v93_v14  ;;  %v201_v21 = vpop.f32.mrb[14].mxu0  ;;  %279 = vmatprep.subr.bf16.mxu1 %v231_v15 }
  0xfa   :  { %v202_v22 = vadd.f32 %v201_v21, %v98_v19  ;;  %v203_v23 = vpop.f32.mrb[15].mxu0  ;;  %280 = vmatpush1.bf16.msra.mxu1 %v230_v13  ;;  %v218_v25 = vmax.f32 %v198_v17, 0.0 }
  0xfb   :  { %v204_v24 = vadd.f32 %v203_v23, %v98_v19  ;;  %v219_v27 = vmax.f32 %v200_v20, 0.0 }
  0xfc   :  { %v220_v26 = vmax.f32 %v202_v22, 0.0 }
  0xfd   :  { %v221_v28 = vmax.f32 %v204_v24, 0.0 }
  0xfe   :  { %v232_v29 = vpack.c.bf16 %v220_v26, %v218_v25 }
  0xff   :  { %v233_v30 = vpack.c.bf16 %v221_v28, %v219_v27 }
 0x101   :  { %281 = vmatprep.subr.bf16.mxu1 %v233_v30 }
 0x102   :  { %282 = vmatpush1.bf16.msra.mxu1 %v232_v29 }
 0x105   :  { %460 = vmatmul.mubr.msk.bf16.vlgmr.msra.gmra.mrb[0].mxu1 %vm268_vm1, %v470_v31 }
 0x106   :  { %317 = vmatprep.mubr.bf16.mxu1 %v480_v3 }
 0x10d   :  { %461 = vmatmul.mubr.msk.bf16.gmra.mrb[4].mxu1 %vm268_vm1, %v471_v32 }
 0x10e   :  { %399 = vmatprep.mubr.bf16.mxu1 %v480_v3 }
 0x1d8   :  { %v309_v34 = vpop.f32.mrb[0].mxu1 }
 0x1d9   :  { %v310_v36 = vadd.f32 %v309_v34, %v241_v33  ;;  %v311_v37 = vpop.f32.mrb[1].mxu1 }
 0x1da   :  { %v312_v39 = vadd.f32 %v311_v37, %v241_v33  ;;  %v313_v40 = vpop.f32.mrb[2].mxu1 }
 0x1db   :  { %v337_v41 = vmul.f32 %v336_v35, %v310_v36  ;;  %v314_v42 = vadd.f32 %v313_v40, %v246_v38  ;;  %v315_v43 = vpop.f32.mrb[3].mxu1  ;;  %vm328_vm2 = vcmp.ge.f32.partialorder %v310_v36, 0.0 }
 0x1dc   :  { %v338_v44 = vmul.f32 %v336_v35, %v312_v39  ;;  %v316_v45 = vadd.f32 %v315_v43, %v246_v38  ;;  %vm329_vm3 = vcmp.ge.f32.partialorder %v312_v39, 0.0 }
 0x1dd   :  { %vm330_vm4 = vcmp.ge.f32.partialorder %v314_v42, 0.0  ;;  %v339_v3 = vmul.f32 %v336_v35, %v314_v42  ;;  %v345_v47 = vsel %vm328_vm2, %v310_v36, %v337_v41 }
 0x1de   :  { %vm331_vm5 = vcmp.ge.f32.partialorder %v316_v45, 0.0  ;;  %v340_v46 = vmul.f32 %v336_v35, %v316_v45  ;;  %v346_v52 = vsel %vm329_vm3, %v312_v39, %v338_v44 }
 0x1df   :  { %v347_v48 = vsel %vm330_vm4, %v314_v42, %v339_v3 }
 0x1e0   :  { %v354_v50 = vpack.c.bf16 %v347_v48, %v345_v47  ;;  %v319_v51 = vpop.f32.mrb[4].mxu1  ;;  %v348_v53 = vsel %vm331_vm5, %v316_v45, %v340_v46 }
 0x1e1   :  { %v320_v54 = vadd.f32 %v319_v51, %v251_v49  ;;  %v321_v55 = vpop.f32.mrb[5].mxu1  ;;  %v355_v56 = vpack.c.bf16 %v348_v53, %v346_v52 }
 0x1e2   :  { %v322_v58 = vadd.f32 %v321_v55, %v251_v49  ;;  %v323_v59 = vpop.f32.mrb[6].mxu1 }
 0x1e3   :  { %v341_v60 = vmul.f32 %v336_v35, %v320_v54  ;;  %v324_v61 = vadd.f32 %v323_v59, %v256_v57  ;;  %v325_v62 = vpop.f32.mrb[7].mxu1  ;;  %367 = vmatprep.subr.bf16.mxu1 %v355_v56  ;;  %vm332_vm6 = vcmp.ge.f32.partialorder %v320_v54, 0.0 }
 0x1e4   :  { %v342_v63 = vmul.f32 %v336_v35, %v322_v58  ;;  %v326_v0 = vadd.f32 %v325_v62, %v256_v57  ;;  %368 = vmatpush1.bf16.msra.mxu1 %v354_v50  ;;  %vm333_vm7 = vcmp.ge.f32.partialorder %v322_v58, 0.0 }
 0x1e5   :  { %vm334_vm8 = vcmp.ge.f32.partialorder %v324_v61, 0.0  ;;  %v343_v1 = vmul.f32 %v336_v35, %v324_v61  ;;  %v349_v4 = vsel %vm332_vm6, %v320_v54, %v341_v60 }
 0x1e6   :  { %vm335_vm9 = vcmp.ge.f32.partialorder %v326_v0, 0.0  ;;  %v344_v2 = vmul.f32 %v336_v35, %v326_v0  ;;  %v350_v7 = vsel %vm333_vm7, %v322_v58, %v342_v63 }
 0x1e7   :  { %v351_v5 = vsel %vm334_vm8, %v324_v61, %v343_v1 }
 0x1e8   :  { %v356_v6 = vpack.c.bf16 %v351_v5, %v349_v4  ;;  %v352_v8 = vsel %vm335_vm9, %v326_v0, %v344_v2 }
 0x1e9   :  { %v357_v9 = vpack.c.bf16 %v352_v8, %v350_v7 }
 0x1eb   :  { %369 = vmatprep.subr.bf16.mxu1 %v357_v9 }
 0x1ec   :  { %370 = vmatpush1.bf16.msra.mxu1 %v356_v6 }
 0x1ef   :  { %462 = vmatmul.mubr.msk.bf16.vlgmr.msra.gmra.mrb[8].mxu1 %vm120_vm0, %v353_v10 }
 0x2c2   :  { %v401_v12 = vpop.f32.mrb[8].mxu1 }
 0x2c3   :  { %v402_v13 = vadd.f32 %v401_v12, %v362_v11  ;;  %v403_v14 = vpop.f32.mrb[9].mxu1 }
 0x2c4   :  { %v404_v15 = vadd.f32 %v403_v14, %v362_v11  ;;  %v405_v16 = vpop.f32.mrb[10].mxu1 }
 0x2c5   :  { %v408_v17 = vrot.slane %v402_v13, 4  ;;  %v406_v18 = vpop.f32.mrb[11].mxu1 }
 0x2c6   :  { %v414_v19 = vrot.slane %v404_v15, 4 }
 0x2c7   :  { %v409_v20 = vmax.f32 %v402_v13, %v408_v17 }
 0x2c8   :  { %v415_v21 = vmax.f32 %v404_v15, %v414_v19 }
 0x2c9   :  { %v410_v22 = vrot.slane %v409_v20, 2 }
 0x2ca   :  { %v416_v23 = vrot.slane %v415_v21, 2 }
 0x2cb   :  { %v411_v24 = vmax.f32 %v409_v20, %v410_v22 }
 0x2cc   :  { %v417_v25 = vmax.f32 %v415_v21, %v416_v23 }
 0x2cd   :  { %v412_v26 = vrot.slane %v411_v24, 1 }
 0x2ce   :  { %v418_v27 = vrot.slane %v417_v25, 1 }
 0x2cf   :  { %v413_v28 = vmax.f32 %v411_v24, %v412_v26 }
 0x2d0   :  { %v419_v29 = vmax.f32 %v417_v25, %v418_v27 }
 0x2d1   :  { %v420_v30 = vsub.f32 %v402_v13, %v413_v28 }
 0x2d2   :  { %v421_v31 = vsub.f32 %v404_v15, %v419_v29 }
 0x2d3   :  { %v422_v32 = vmul.f32 1.442695, %v420_v30 }
 0x2d4   :  { %v424_v33 = vmul.f32 1.442695, %v421_v31 }
 0x2d5   :  { %472 = vpow2.f32 %v422_v32 }
 0x2d6   :  { %474 = vpow2.f32 %v424_v33 }
 0x2df   :  { %v473_v34 = vpop.eup %472 }
 0x2e0   :  { %v475_v35 = vpop.eup %474  ;;  %v426_v36 = vrot.slane %v473_v34, 4 }
 0x2e1   :  { %v432_v37 = vrot.slane %v475_v35, 4 }
 0x2e2   :  { %v427_v38 = vadd.f32 %v473_v34, %v426_v36 }
 0x2e3   :  { %v433_v39 = vadd.f32 %v475_v35, %v432_v37 }
 0x2e4   :  { %v428_v40 = vrot.slane %v427_v38, 2 }
 0x2e5   :  { %v434_v41 = vrot.slane %v433_v39, 2 }
 0x2e6   :  { %v429_v42 = vadd.f32 %v428_v40, %v427_v38 }
 0x2e7   :  { %v435_v43 = vadd.f32 %v434_v41, %v433_v39 }
 0x2e8   :  { %v430_v44 = vrot.slane %v429_v42, 1 }
 0x2e9   :  { %v436_v45 = vrot.slane %v435_v43, 1 }
 0x2ea   :  { %v431_v3 = vadd.f32 %v430_v44, %v429_v42 }
 0x2eb   :  { %v437_v46 = vadd.f32 %v436_v45, %v435_v43 }
 0x2ec   :  { %476 = vlog2.f32 %v431_v3 }
 0x2ed   :  { %478 = vlog2.f32 %v437_v46 }
 0x2f6   :  { %v477_v47 = vpop.eup %476 }
 0x2f7   :  { %v479_v48 = vpop.eup %478  ;;  %v439_v49 = vmul.f32 0.6931472, %v477_v47 }
 0x2f8   :  { %v441_v50 = vmul.f32 0.6931472, %v479_v48 }
 0x2f9   :  { %v442_v51 = vsub.f32 %v420_v30, %v439_v49 }
 0x2fa   :  { %v443_v52 = vsub.f32 %v421_v31, %v441_v50 }
 0x2fb   :  { %444 = vst [vmem:[%s641_s8] sm:$0xff] %v442_v51 }
 0x2fc   :  { %445 = vst [vmem:[%s641_s8 + $0x8] sm:$0xff] %v443_v52 }

</bundles_post_ra>
